<compile_context>
chip_gen: v7x
topology: tpu7x:2x2x1
jax: 0.10.0
libtpu: 0.0.40
codegen_flags: <defaults>
</compile_context>

<pallas_src>
import jax
import jax.numpy as jnp
from jax.experimental import pallas as pl
from jax.experimental.pallas import tpu as pltpu

_LANE = 128
_SUBLANE = 8


def _film_kernel(x_ref, g_ref, b_ref, o_ref):
    # x_ref / o_ref: (TR, TL)   g_ref / b_ref: (TR, 1)
    # Elementwise FiLM modulation; gamma/beta broadcast along the lane axis.
    o_ref[...] = (g_ref[...] * x_ref[...] + b_ref[...]).astype(o_ref.dtype)


def film_forward(x, gamma, beta, *, tile_l=None, tile_r=None,
                 max_tile_bytes=1 << 20):
    """FiLM forward: gamma[:, :, None] * x + beta[:, :, None].

    x     : (B, C, L)  any float dtype
    gamma : (B, C)
    beta  : (B, C)
    returns (B, C, L) in the promoted dtype of (x, gamma, beta)
    """
    B, C, L = x.shape
    assert gamma.shape == (B, C), gamma.shape
    assert beta.shape == (B, C), beta.shape

    out_dtype = jnp.result_type(x.dtype, gamma.dtype, beta.dtype)
    itemsize = jnp.dtype(x.dtype).itemsize

    # Flatten batch*channel into rows; gamma/beta become per-row scalars.
    R = B * C
    x2 = x.reshape(R, L)
    g2 = gamma.reshape(R, 1).astype(out_dtype)
    b2 = beta.reshape(R, 1).astype(out_dtype)

    # ---- choose tile sizes (lane axis first: lane-dense output is the big lever) ----
    l_pad = pl.cdiv(L, _LANE) * _LANE
    r_pad = pl.cdiv(R, _SUBLANE) * _SUBLANE

    if tile_l is None:
        # Largest lane multiple such that an 8-row block stays under max_tile_bytes.
        lane_cap = max(_LANE,
                       (max_tile_bytes // max(_SUBLANE * itemsize, 1)) // _LANE * _LANE)
        tl = min(l_pad, lane_cap)
    else:
        assert tile_l % _LANE == 0, "tile_l must be a multiple of 128"
        tl = min(tile_l, l_pad)

    if tile_r is None:
        row_cap = max(_SUBLANE,
                      (max_tile_bytes // max(tl * itemsize, 1)) // _SUBLANE * _SUBLANE)
        tr = min(r_pad, row_cap)
    else:
        assert tile_r % _SUBLANE == 0, "tile_r must be a multiple of 8"
        tr = min(tile_r, r_pad)

    # Pad padded extents up to tile multiples.
    l_pad = pl.cdiv(l_pad, tl) * tl
    r_pad = pl.cdiv(r_pad, tr) * tr

    if (r_pad, l_pad) != (R, L):
        x2 = jnp.pad(x2, ((0, r_pad - R), (0, l_pad - L)))
    if r_pad != R:
        g2 = jnp.pad(g2, ((0, r_pad - R), (0, 0)))
        b2 = jnp.pad(b2, ((0, r_pad - R), (0, 0)))

    # Grid: rows outer, L-tiles inner (innermost varies fastest), so the tiny
    # gamma/beta blocks keep a constant block index across the inner loop and
    # are not re-fetched per L tile.
    grid = (r_pad // tr, l_pad // tl)

    out = pl.pallas_call(
        _film_kernel,
        out_shape=jax.ShapeDtypeStruct((r_pad, l_pad), out_dtype),
        grid=grid,
        in_specs=[
            pl.BlockSpec((tr, tl), lambda r, l: (r, l)),
            pl.BlockSpec((tr, 1), lambda r, l: (r, 0)),
            pl.BlockSpec((tr, 1), lambda r, l: (r, 0)),
        ],
        out_specs=pl.BlockSpec((tr, tl), lambda r, l: (r, l)),
        compiler_params=pltpu.CompilerParams(
            dimension_semantics=("parallel", "parallel")),
    )(x2, g2, b2)

    if (r_pad, l_pad) != (R, L):
        out = out[:R, :L]
    return out.reshape(B, C, L)


if __name__ == "__main__":
    # TODO(synk): the PyTorch module obtains gamma/beta from factory.get_weights()
    # (a hypernetwork hook) -- no Pallas equivalent, so the kernel takes gamma and
    # beta as explicit arrays.
    key = jax.random.PRNGKey(0)
    kx, kg, kb = jax.random.split(key, 3)

    # Test 1: aligned shapes, multiple L tiles (grid (1, 2)).
    B, C, L = 2, 4, 512
    x = jax.random.normal(kx, (B, C, L), dtype=jnp.float32)
    gamma = jax.random.normal(kg, (B, C), dtype=jnp.float32)
    beta = jax.random.normal(kb, (B, C), dtype=jnp.float32)

    y = jax.block_until_ready(film_forward(x, gamma, beta, tile_l=256))
    y_ref = gamma[:, :, None] * x + beta[:, :, None]
    assert y.shape == (B, C, L)
    assert jnp.allclose(y, y_ref, atol=1e-6, rtol=1e-6)

    # Test 2: ragged trailing dim (padded to a lane multiple, sliced back).
    L2 = 200
    x2 = jax.random.normal(kx, (B, C, L2), dtype=jnp.float32)
    y2 = jax.block_until_ready(film_forward(x2, gamma, beta))
    y2_ref = gamma[:, :, None] * x2 + beta[:, :, None]
    assert y2.shape == (B, C, L2)
    assert jnp.allclose(y2, y2_ref, atol=1e-6, rtol=1e-6)

    # Test 3: B*C not a multiple of 8 (row-padding path).
    B3, C3, L3 = 3, 5, 384
    k1, k2, k3 = jax.random.split(kg, 3)
    x3 = jax.random.normal(k1, (B3, C3, L3), dtype=jnp.float32)
    g3 = jax.random.normal(k2, (B3, C3), dtype=jnp.float32)
    b3 = jax.random.normal(k3, (B3, C3), dtype=jnp.float32)
    y3 = jax.block_until_ready(film_forward(x3, g3, b3, tile_l=128))
    y3_ref = g3[:, :, None] * x3 + b3[:, :, None]
    assert y3.shape == (B3, C3, L3)
    assert jnp.allclose(y3, y3_ref, atol=1e-6, rtol=1e-6)

    print("KERNEL_OK")
</pallas_src>

<mosaic_0001>
module attributes {stable_mosaic.version = 11 : i64} {
  func.func @_film_kernel(%arg0: i32, %arg1: i32, %arg2: memref<8x256xf32, #tpu.memory_space<vmem>>, %arg3: memref<8x1xf32, #tpu.memory_space<vmem>>, %arg4: memref<8x1xf32, #tpu.memory_space<vmem>>, %arg5: memref<8x256xf32, #tpu.memory_space<vmem>>) attributes {dimension_semantics = [#tpu.dimension_semantics<parallel>, #tpu.dimension_semantics<parallel>], iteration_bounds = array<i64: 1, 2>, scalar_prefetch = 0 : i64, scratch_operands = 0 : i64, tpu.core_type = #tpu.core_type<tc>, window_params = [{transform_indices = @transform_0, window_bounds = array<i64: 8, 256>}, {transform_indices = @transform_1, window_bounds = array<i64: 8, 1>}, {transform_indices = @transform_2, window_bounds = array<i64: 8, 1>}, {transform_indices = @transform_3, window_bounds = array<i64: 8, 256>}]} {
    %c0 = arith.constant 0 : index
    %c0_0 = arith.constant 0 : index
    %0 = vector.load %arg3[%c0, %c0_0] : memref<8x1xf32, #tpu.memory_space<vmem>>, vector<8x1xf32>
    %c0_1 = arith.constant 0 : index
    %c0_2 = arith.constant 0 : index
    %1 = vector.load %arg2[%c0_1, %c0_2] : memref<8x256xf32, #tpu.memory_space<vmem>>, vector<8x256xf32>
    %2 = vector.broadcast %0 : vector<8x1xf32> to vector<8x256xf32>
    %3 = arith.mulf %2, %1 : vector<8x256xf32>
    %c0_3 = arith.constant 0 : index
    %c0_4 = arith.constant 0 : index
    %4 = vector.load %arg4[%c0_3, %c0_4] : memref<8x1xf32, #tpu.memory_space<vmem>>, vector<8x1xf32>
    %5 = vector.broadcast %4 : vector<8x1xf32> to vector<8x256xf32>
    %6 = arith.addf %3, %5 : vector<8x256xf32>
    %c0_5 = arith.constant 0 : index
    %c0_6 = arith.constant 0 : index
    %7 = vector.load %arg5[%c0_5, %c0_6] : memref<8x256xf32, #tpu.memory_space<vmem>>, vector<8x256xf32>
    tpu.vector_store %arg5[%c0_5, %c0_6], %6 {strides = array<i32>} : memref<8x256xf32, #tpu.memory_space<vmem>>, vector<8x256xf32>,
    return
  }
  func.func @transform_0(%arg0: i32, %arg1: i32) -> (i32, i32) {
    %c0_i32 = arith.constant 0 : i32
    return %arg0, %arg1 : i32, i32
  }
  func.func @transform_1(%arg0: i32, %arg1: i32) -> (i32, i32) {
    %c0_i32 = arith.constant 0 : i32
    %c0_i32_0 = arith.constant 0 : i32
    return %arg0, %c0_i32 : i32, i32
  }
  func.func @transform_2(%arg0: i32, %arg1: i32) -> (i32, i32) {
    %c0_i32 = arith.constant 0 : i32
    %c0_i32_0 = arith.constant 0 : i32
    return %arg0, %c0_i32 : i32, i32
  }
  func.func @transform_3(%arg0: i32, %arg1: i32) -> (i32, i32) {
    %c0_i32 = arith.constant 0 : i32
    return %arg0, %arg1 : i32, i32
  }
}

</mosaic_0001>

<bundles_post_ra>
// kernel: tpu_custom_call.1
= control target key start
LH: loop header
LB: loop body
LE: loop exit
PB: predicated region body
PF: predicated region fallthrough
CT: control target
= control target key end

     0   :  { %8 = vsyncpa [#allocation3], 0  ;;  %s790_s0 = inlined_call_operand.hbm [shape: f32[8,512], index: 0, kind: input, shape index: {}]   ;;  %s791_s1 = inlined_call_operand.vmem [shape: f32[8,1], index: 1, kind: input, shape index: {}]   ;;  %s792_s2 = inlined_call_operand.vmem [shape: f32[8,1], index: 2, kind: input, shape index: {}]   ;;  %s793_s3 = inlined_call_operand.hbm [shape: f32[8,512], index: 3, kind: output, shape index: {}]  }
   0x1   :  { %10 = vsyncpa [#allocation3 + $0x1], 0 }
   0x2   :  { %11 = vsyncpa [#allocation4], 0 }
   0x3   :  { %13 = vsyncpa [#allocation4 + $0x1], 0  ;;  %s612_s12 = smov 0   ;;  %s614_s13 = smov 0  }
   0x4   :  { %s616_s14 = smov 0   ;;  %s618_s15 = smov 0  }
   0x5   :  { %s620_s16 = smov 0   ;;  %s622_s17 = smov 0  }
   0x6 LB: > { %s392_s18 = sadd.s32 4294967295, %s587_s17   ;;  %s393_s19 = sadd.s32 4294967294, %s587_s17   ;;  %s587_s17 = sphi %s622_s17, %s19_s17   ;;  %s583_s16 = sphi %s620_s16, %s809_s16   ;;  %s579_s15 = sphi %s618_s15, %s808_s15   ;;  %s575_s14 = sphi %s616_s14, %s807_s14   ;;  %s571_s13 = sphi %s614_s13, %s806_s13   ;;  %s567_s12 = sphi %s612_s12, %s805_s12  }
   0x7   : > { %s28_s20 = sadd.s32 1, %s583_s16  ;;  %s40_s21 = sadd.s32 1, %s575_s14 }
   0x8   : > { %p29_p0 = scmp.ge.s32.totalorder %s28_s20, 2  ;;  %p47_p1 = scmp.ne.s32.totalorder %s575_s14, %s571_s13 }
   0x9   : > { %p48_p2 = scmp.eq.s32.totalorder %s587_s17, 0  ;;  %p53_p3 = scmp.ne.s32.totalorder %s571_s13, %s567_s12 }
   0xa   : > { %s811_s20 = smov (%p29_p0, %s28_s20), 0  ;;  %p54_p5 = scmp.eq.s32.totalorder %s392_s18, 0 }
   0xb   : > { %p653_p4 = por %p48_p2, %p47_p1  ;;  %s36_s23 = ssub.s32 %s583_s16, %s811_s20 }
   0xc   : > { %p131_p6 = scmp.eq.s32.totalorder %s392_s18, 1  ;;  %p38_p7 = scmp.eq.s32.totalorder %s36_s23, 0 }
   0xd   : > { %p659_p8 = por %p54_p5, %p53_p3  ;;  %p137_p10 = scmp.eq.s32.totalorder %s393_s19, 1 }
   0xe   : > { %p663_p9 = por %p131_p6, %p47_p1  ;;  %p423_p13 = scmp.lt.s32.totalorder %s587_s17, 2 }
   0xf   : > { %s668_s26 = scalar_select %p38_p7, %s575_s14, %s40_s21  }
  0x10   : > { %s797_s25 = scalar_select %p663_p9, 1, 0 }
  0x11   : > { %p670_p11 = por %p137_p10, %p53_p3  ;;  %s171_s28 = sand.u32 1, %s575_s14  }
  0x12   : > { %s398_s29 = sshll.u32 %s171_s28, 4  ;;  %s409_s30 = sshll.u32 %s583_s16, 8 }
  0x13   : > { %s798_s27 = scalar_select %p670_p11, 1, 0 }
  0x14   : > { %s681_s6 = scalar_lea.hbm %s790_s0, %s409_s30  ;;  %s175_s7 = scalar_lea.vmem [#allocation2], %s398_s29 }
  0x15   : > { %s185_s8 = sshll.u32 %s175_s7, 4  ;;  %p687_p0 = pnand %p423_p13, %p653_p4  ;;  %s683_s8 = int_to_ptr.vmem [resolvable:$true] %s185_s8 }
  0x16   : > { %s172_s10 = scalar_lea.sflag [#allocation3], %s171_s28  ;;  %s475_s11 = scalar_lea.hbm %s681_s6, 256 }
  0x17   : > { %p476_p3 = scmp.ne.s32.totalorder %s681_s6, %s475_s11  ;;  %p477_p5 = pneg %p687_p0 }
  0x18   : > { %s480_s21 = scalar_lea.hbm %s790_s0, 512  ;;  %p481_p4 = scmp.lt.u32.totalorder %s681_s6, %s790_s0 }
  0x19   : > { %p478_p6 = pnand %p477_p5, %p476_p3  ;;  %p482_p10 = scmp.lt.u32.totalorder %s480_s21, %s475_s11 }
  0x1a   : > { %p484_p12 = scmp.lt.u32.totalorder %s475_s11, %s681_s6 }
  0x1b   : > { %p479_p7 = pneg %p478_p6  ;;  %p483_p13 = por %p482_p10, %p481_p4 }
  0x1d   : > { %p485_p1 = por %p484_p12, %p483_p13 }
  0x1f   : > { %p486_p2 = pnand %p485_p1, %p479_p7 }
  0x21   : > { %489 = shalt.err (!%p486_p2)
}
  0x22   : > { %s490_s28 = scalar_lea.vmem %s683_s8, 256  ;;  %s589_s29 = smov [#allocation2]  }
  0x23   : > { %p491_p3 = scmp.ne.s32.totalorder %s683_s8, %s490_s28  ;;  %s495_s30 = sshll.u32 %s589_s29, 4  ;;  %s496_s30 = int_to_ptr.vmem [resolvable:$false] %s495_s30 }
  0x24   : > { %s497_s4 = scalar_lea.vmem %s496_s30, 512  ;;  %p498_p9 = scmp.lt.s32.totalorder %s683_s8, %s496_s30 }
  0x25   : > { %p493_p6 = pnand %p491_p3, %p477_p5  ;;  %p499_p4 = scmp.lt.s32.totalorder %s497_s4, %s490_s28 }
  0x27   : > { %p494_p11 = pneg %p493_p6  ;;  %p500_p10 = por %p499_p4, %p498_p9 }
  0x29   : > { %p501_p12 = pnand %p500_p10, %p494_p11 }
  0x2b   : > { %504 = shalt.err (!%p501_p12)
}
  0x2c   : > { %418 = dma.hbm_to_vmem [thread:$0]  (!%p687_p0), %s681_s6, 256, %s683_s8, %s172_s10  }
  0x2d   : > { %p800_p1 = scmp.lt.s32.totalorder %s587_s17, 3  ;;  %p801_p2 = scmp.ge.s32.totalorder %s587_s17, 1 }
  0x2f   : > { %p191_p5 = pnand %p801_p2, %p800_p1 }
  0x30   : > { %s723_s5 = sand.u32 (!%p191_p5), 1, %s571_s13  }
  0x31   : > { %194 = sbr.rel (%p191_p5) target bundleno = 207 (0xcf), region = 32  ;;  %s402_s7 = sshll.u32 (!%p191_p5), %s723_s5, 4 }
  0x32   : > { %s197_s11 = scalar_lea.sflag (!%p191_p5), [#allocation3], %s723_s5  ;;  %s200_s18 = scalar_lea.vmem (!%p191_p5), [#allocation2], %s402_s7 }
  0x38   : > { %558 = dma.done.wait (%p659_p8), %s197_s11, 256  }
  0x39   : > { %560 = vsyncadd (%p659_p8), %s197_s11, 4294967040  ;;  %v590_v0 = vmov 0   ;;  %v241_v1 = vld [vmem:[%s791_s1] sm:$0xff]  ;;  %v243_v4 = vld [vmem:[%s200_s18 + $0x8] sm:$0xff]  ;;  %s410_s24 = sshll.u32 %s579_s15, 8  ;;  %s230_s19 = scalar_lea.vmem [#allocation5], %s402_s7 }
  0x3a   : > { %474 = vset.pattern.permute.xlu0 %v590_v0  ;;  %v251_v2 = vld [vmem:[%s792_s2] sm:$0xff]  ;;  %s278_s21 = sshll.u32 %s230_s19, 4  ;;  %s741_s28 = scalar_lea.hbm %s793_s3, %s410_s24  ;;  %s743_s21 = int_to_ptr.vmem [resolvable:$true] %s278_s21 }
  0x3b   : > { %246 = vperm.xlu0 %474, %v241_v1   ;;  %v242_v3 = vld [vmem:[%s200_s18] sm:$0xff]  ;;  %s262_s15 = scalar_lea.sflag [#allocation4], %s723_s5  ;;  %s505_s29 = scalar_lea.vmem %s743_s21, 256 }
  0x3c   : > { %p506_p8 = scmp.ne.s32.totalorder %s743_s21, %s505_s29  ;;  %p802_p9 = scmp.ne.s32.totalorder %s797_s25, 0 }
  0x3d   : > { %s591_s30 = smov [#allocation5]  }
  0x3e   : > { %p507_p11 = pnand %p506_p8, %p802_p9  ;;  %s509_s4 = sshll.u32 %s591_s30, 4  ;;  %s510_s4 = int_to_ptr.vmem [resolvable:$false] %s509_s4 }
  0x3f   : > { %254 = vperm.xlu0 %474, %v251_v2   ;;  %s511_s7 = scalar_lea.vmem %s510_s4, 512  ;;  %p512_p7 = scmp.lt.s32.totalorder %s743_s21, %s510_s4 }
  0x40   : > { %p508_p0 = pneg %p507_p11  ;;  %p513_p13 = scmp.lt.s32.totalorder %s511_s7, %s505_s29 }
  0x42   : > { %p514_p3 = por %p513_p13, %p512_p7 }
  0x44   : > { %p515_p6 = pnand %p514_p3, %p508_p0 }
  0xba   : > { %v247_v5 = vpop.permute.xlu0 %246 }
  0xbb   : > { %v249_v6 = vmul.f32 %v247_v5, %v242_v3  ;;  %v250_v7 = vmul.f32 %v247_v5, %v243_v4 }
  0xbe   : > { %v255_v8 = vpop.permute.xlu0 %254 }
  0xbf   : > { %v257_v9 = vadd.f32 %v255_v8, %v249_v6  ;;  %v258_v10 = vadd.f32 %v255_v8, %v250_v7 }
  0xc1   : > { %259 = vst [vmem:[%s230_s19] sm:$0xff] %v257_v9  ;;  %260 = vst [vmem:[%s230_s19 + $0x8] sm:$0xff] %v258_v10 }
  0xc2   : > { %518 = shalt.err (!%p515_p6)
}
  0xc3   : > { %s519_s5 = scalar_lea.hbm %s741_s28, 256  ;;  %s523_s6 = scalar_lea.hbm %s793_s3, 512 }
  0xc4   : > { %p520_p4 = scmp.ne.s32.totalorder %s741_s28, %s519_s5  ;;  %p524_p1 = scmp.lt.u32.totalorder %s741_s28, %s793_s3 }
  0xc5   : > { %p525_p2 = scmp.lt.u32.totalorder %s523_s6, %s519_s5  ;;  %p527_p8 = scmp.lt.u32.totalorder %s519_s5, %s741_s28 }
  0xc6   : > { %p521_p10 = pnand %p520_p4, %p802_p9 }
  0xc7   : > { %p526_p5 = por %p525_p2, %p524_p1 }
  0xc8   : > { %p522_p12 = pneg %p521_p10 }
  0xc9   : > { %p528_p11 = por %p527_p8, %p526_p5 }
  0xcb   : > { %p529_p0 = pnand %p528_p11, %p522_p12 }
  0xcd   : > { %532 = shalt.err (!%p529_p0)
}
  0xce   : > { %413 = dma.vmem_to_hbm [thread:$0]  (%p802_p9), %s743_s21, 256, %s741_s28, %s262_s15  }
  0xcf PF: > { %s290_s10 = sand.u32 1, %s567_s12   ;;  %p803_p7 = scmp.ne.s32.totalorder %s798_s27, 0 }
  0xd0   : > { %p804_p13 = scmp.ge.s32.totalorder %s587_s17, 2  ;;  %s291_s24 = scalar_lea.sflag [#allocation4], %s290_s10 }
  0xd2   : > { %p420_p3 = pnand %p804_p13, %p803_p7 }
  0xd4   : > { %562 = dma.done.wait (!%p420_p3), %s291_s24, 256  }
  0xd5   : > { %564 = vsyncadd (!%p420_p3), %s291_s24, 4294967040  ;;  %s19_s17 = sadd.s32 1, %s587_s17   ;;  %s805_s12 = smov %s571_s13 }
  0xd6   : > { %p16_p6 = scmp.ge.s32.totalorder %s19_s17, 4   ;;  %s806_s13 = smov %s575_s14 }
  0xd7   : > { %s807_s14 = smov %s668_s26  ;;  %s808_s15 = smov %s583_s16 }
  0xd8   : > { %s809_s16 = smov %s811_s20  ;;  %18 = sbr.rel (!%p16_p6) target bundleno = 6 (0x6), region = 83 }
  0xdf   :  { %296 = vsyncpa [#allocation3], 1 }
  0xe0   :  { %298 = vsyncpa [#allocation3 + $0x1], 1 }
  0xe1   :  { %299 = vsyncpa [#allocation4], 1 }
  0xe2   :  { %301 = vsyncpa [#allocation4 + $0x1], 1 }

</bundles_post_ra>
